<compile_context>
chip_gen: v7x
topology: tpu7x:2x2x1
jax: 0.10.0
libtpu: 0.0.40
codegen_flags: <defaults>
</compile_context>

<pallas_src>
import functools

import jax
import jax.numpy as jnp
from jax import lax
from jax.experimental import pallas as pl
from jax.experimental.pallas import tpu as pltpu

LEAKY_SLOPE = 0.01   # nn.LeakyReLU default
BN_EPS = 1e-5        # nn.BatchNorm1d default

# Packed-vector slab: one (8,128) f32 tile.
#   row 0: gamma1[0:64]   row 1: beta1[0:64]
#   row 2: gamma2[0:32]   row 3: beta2[0:32]
#   row 4: gamma3[0:16]   row 5: beta3[0:16]
#   row 6: b4[0:1]        row 7: w4[0:16]   (Linear(16,1) weight as a row)
VEC_ROWS, VEC_LANES = 8, 128

FUSED_MAX_BATCH = 1024   # whole-batch-in-VMEM path cutoff (safe on v5e 16 MiB)
TILE_B = 1024            # default batch tile for the tiled path


def _leaky(h):
    # max(h, slope*h) == LeakyReLU(h) for slope in (0, 1)
    return jnp.maximum(h, LEAKY_SLOPE * h)


def _unpack_vec(vec):
    g1, be1 = vec[0:1, 0:64], vec[1:2, 0:64]
    g2, be2 = vec[2:3, 0:32], vec[3:4, 0:32]
    g3, be3 = vec[4:5, 0:16], vec[5:6, 0:16]
    b4 = vec[6:7, 0:1]        # (1, 1)
    w4r = vec[7:8, 0:16]      # (1, 16)
    return g1, be1, g2, be2, g3, be3, b4, w4r


# ----------------------------------------------------------------------------
# Fused whole-batch kernel (small / medium B)
# ----------------------------------------------------------------------------
def _fused_kernel(x_ref, w1_ref, w2_ref, w3_ref, vec_ref, o_ref):
    g1, be1, g2, be2, g3, be3, b4, w4r = _unpack_vec(vec_ref[...])

    def bn_leaky(h, g, be):
        # training-mode BN, centered (two-moment) variance in f32
        mean = jnp.mean(h, axis=0, keepdims=True)
        c = h - mean
        var = jnp.mean(c * c, axis=0, keepdims=True)
        return _leaky(c * lax.rsqrt(var + BN_EPS) * g + be)

    x = x_ref[...].astype(jnp.bfloat16)
    h = jnp.dot(x, w1_ref[...], preferred_element_type=jnp.float32)
    h = bn_leaky(h, g1, be1)
    h = jnp.dot(h.astype(jnp.bfloat16), w2_ref[...],
                preferred_element_type=jnp.float32)
    h = bn_leaky(h, g2, be2)
    h = jnp.dot(h.astype(jnp.bfloat16), w3_ref[...],
                preferred_element_type=jnp.float32)
    h = bn_leaky(h, g3, be3)

    # Final Linear(16, 1) as elementwise-mul + lane reduction (XLU slot).
    z = jnp.sum(h * w4r, axis=1, keepdims=True) + b4          # (B, 1)
    o_ref[...] = (1.0 / (1.0 + jnp.exp(-z))).astype(o_ref.dtype)


def _fused_forward(x, w1, w2, w3, vec):
    B = x.shape[0]
    vmem = pl.BlockSpec(memory_space=pltpu.MemorySpace.VMEM)
    return pl.pallas_call(
        _fused_kernel,
        out_shape=jax.ShapeDtypeStruct((B, 1), jnp.float32),
        in_specs=[vmem] * 5,
        out_specs=vmem,
    )(x, w1, w2, w3, vec)


# ----------------------------------------------------------------------------
# Batch-tiled kernel (large B): grid = (4 passes, num_tiles)
#   pass 0: layer-1 sum/sumsq        pass 1: layer-2 sum/sumsq
#   pass 2: layer-3 sum/sumsq        pass 3: normalize + output
# stats scratch rows: [sum1, sumsq1, sum2, sumsq2, sum3, sumsq3] -> after each
# pass the pair is finalized in place to [mean, rsqrt(var+eps)].
# ----------------------------------------------------------------------------
def _make_tiled_kernel(b_total, tile_b):
    inv_b = 1.0 / float(b_total)

    def kernel(x_ref, w1_ref, w2_ref, w3_ref, vec_ref, o_ref, stats_ref):
        p = pl.program_id(0)
        t = pl.program_id(1)
        nt = pl.num_programs(1)

        g1, be1, g2, be2, g3, be3, b4, w4r = _unpack_vec(vec_ref[...])

        @pl.when((p == 0) & (t == 0))
        def _():
            stats_ref[...] = jnp.zeros_like(stats_ref)

        # Mask for padded rows of the last tile (B padded up to nt*tile_b).
        row = lax.broadcasted_iota(jnp.int32, (tile_b, 1), 0) + t * tile_b
        valid = (row < b_total).astype(jnp.float32)            # (tile_b, 1)

        def layer1():
            x = x_ref[...].astype(jnp.bfloat16)
            return jnp.dot(x, w1_ref[...], preferred_element_type=jnp.float32)

        def bn_apply(h, row0, n, g, be):
            mean = stats_ref[row0:row0 + 1, 0:n]
            inv = stats_ref[row0 + 1:row0 + 2, 0:n]
            return _leaky((h - mean) * inv * g + be)

        def accum(h, row0, n):
            hv = h * valid
            s0 = stats_ref[row0:row0 + 1, 0:n]
            s1 = stats_ref[row0 + 1:row0 + 2, 0:n]
            stats_ref[row0:row0 + 1, 0:n] = s0 + jnp.sum(
                hv, axis=0, keepdims=True)
            stats_ref[row0 + 1:row0 + 2, 0:n] = s1 + jnp.sum(
                hv * h, axis=0, keepdims=True)

        def finalize(row0, n):
            s = stats_ref[row0:row0 + 1, 0:n]
            sq = stats_ref[row0 + 1:row0 + 2, 0:n]
            mean = s * inv_b
            # Streaming (one-sweep) moment form; clamp guards cancellation.
            var = jnp.maximum(sq * inv_b - mean * mean, 0.0)
            stats_ref[row0:row0 + 1, 0:n] = mean
            stats_ref[row0 + 1:row0 + 2, 0:n] = lax.rsqrt(var + BN_EPS)

        @pl.when(p == 0)
        def _():
            accum(layer1(), 0, 64)

            @pl.when(t == nt - 1)
            def _():
                finalize(0, 64)
            o_ref[...] = jnp.zeros_like(o_ref)

        @pl.when(p == 1)
        def _():
            a1 = bn_apply(layer1(), 0, 64, g1, be1)
            h2 = jnp.dot(a1.astype(jnp.bfloat16), w2_ref[...],
                         preferred_element_type=jnp.float32)
            accum(h2, 2, 32)

            @pl.when(t == nt - 1)
            def _():
                finalize(2, 32)
            o_ref[...] = jnp.zeros_like(o_ref)

        @pl.when(p == 2)
        def _():
            a1 = bn_apply(layer1(), 0, 64, g1, be1)
            h2 = jnp.dot(a1.astype(jnp.bfloat16), w2_ref[...],
                         preferred_element_type=jnp.float32)
            a2 = bn_apply(h2, 2, 32, g2, be2)
            h3 = jnp.dot(a2.astype(jnp.bfloat16), w3_ref[...],
                         preferred_element_type=jnp.float32)
            accum(h3, 4, 16)

            @pl.when(t == nt - 1)
            def _():
                finalize(4, 16)
            o_ref[...] = jnp.zeros_like(o_ref)

        @pl.when(p == 3)
        def _():
            a1 = bn_apply(layer1(), 0, 64, g1, be1)
            h2 = jnp.dot(a1.astype(jnp.bfloat16), w2_ref[...],
                         preferred_element_type=jnp.float32)
            a2 = bn_apply(h2, 2, 32, g2, be2)
            h3 = jnp.dot(a2.astype(jnp.bfloat16), w3_ref[...],
                         preferred_element_type=jnp.float32)
            a3 = bn_apply(h3, 4, 16, g3, be3)
            z = jnp.sum(a3 * w4r, axis=1, keepdims=True) + b4   # (tile_b, 1)
            o_ref[...] = (1.0 / (1.0 + jnp.exp(-z))).astype(o_ref.dtype)

    return kernel


def _tiled_forward(x, w1, w2, w3, vec, tile_b=TILE_B):
    B, D = x.shape
    nt = pl.cdiv(B, tile_b)
    b_pad = nt * tile_b
    if b_pad != B:
        x = jnp.pad(x, ((0, b_pad - B), (0, 0)))   # padded rows masked in-kernel

    kernel = _make_tiled_kernel(B, tile_b)
    out = pl.pallas_call(
        kernel,
        out_shape=jax.ShapeDtypeStruct((b_pad, 1), jnp.float32),
        grid_spec=pltpu.PrefetchScalarGridSpec(
            num_scalar_prefetch=0,
            grid=(4, nt),
            in_specs=[
                pl.BlockSpec((tile_b, D), lambda p, t: (t, 0)),
                pl.BlockSpec((D, 64), lambda p, t: (0, 0)),
                pl.BlockSpec((64, 32), lambda p, t: (0, 0)),
                pl.BlockSpec((32, 16), lambda p, t: (0, 0)),
                pl.BlockSpec((VEC_ROWS, VEC_LANES), lambda p, t: (0, 0)),
            ],
            out_specs=pl.BlockSpec((tile_b, 1), lambda p, t: (t, 0)),
            scratch_shapes=[pltpu.VMEM((VEC_ROWS, VEC_LANES), jnp.float32)],
        ),
        compiler_params=pltpu.CompilerParams(
            # stats accumulate across tiles -> both axes are sequential here
            dimension_semantics=("arbitrary", "arbitrary")),
    )(x, w1, w2, w3, vec)
    return out[:B]


# ----------------------------------------------------------------------------
# Params / wrapper
# ----------------------------------------------------------------------------
def init_params(key, input_shape):
    """PyTorch-style init: Linear W,b ~ U(-1/sqrt(fan_in), 1/sqrt(fan_in));
    BatchNorm gamma=1, beta=0."""
    dims = [int(input_shape), 64, 32, 16, 1]
    keys = jax.random.split(key, 8)
    params = {}
    for li in range(4):
        fan_in, fan_out = dims[li], dims[li + 1]
        bound = 1.0 / jnp.sqrt(jnp.float32(fan_in))
        params[f"w{li + 1}"] = jax.random.uniform(
            keys[2 * li], (fan_in, fan_out), jnp.float32, -bound, bound)
        params[f"b{li + 1}"] = jax.random.uniform(
            keys[2 * li + 1], (fan_out,), jnp.float32, -bound, bound)
        if li < 3:
            params[f"gamma{li + 1}"] = jnp.ones((fan_out,), jnp.float32)
            params[f"beta{li + 1}"] = jnp.zeros((fan_out,), jnp.float32)
    return params


def pack_params(params):
    """Run ONCE at init.  Returns (w1_bf16, w2_bf16, w3_bf16, vec_slab).
    b1..b3 are dropped on purpose (cancelled by training-mode BN)."""
    vec = jnp.zeros((VEC_ROWS, VEC_LANES), jnp.float32)
    vec = vec.at[0, 0:64].set(params["gamma1"])
    vec = vec.at[1, 0:64].set(params["beta1"])
    vec = vec.at[2, 0:32].set(params["gamma2"])
    vec = vec.at[3, 0:32].set(params["beta2"])
    vec = vec.at[4, 0:16].set(params["gamma3"])
    vec = vec.at[5, 0:16].set(params["beta3"])
    vec = vec.at[6, 0:1].set(params["b4"])
    vec = vec.at[7, 0:16].set(params["w4"][:, 0])
    return (params["w1"].astype(jnp.bfloat16),
            params["w2"].astype(jnp.bfloat16),
            params["w3"].astype(jnp.bfloat16),
            vec)


def discriminator_forward(x, packed):
    """x: (B, input_shape) f32; packed = pack_params(params).  Returns (B,1)."""
    w1, w2, w3, vec = packed
    if x.shape[0] <= FUSED_MAX_BATCH:
        return _fused_forward(x, w1, w2, w3, vec)
    return _tiled_forward(x, w1, w2, w3, vec)


# Pure-JAX reference (full module semantics incl. b1..b3; bf16 matmul operands
# matched to the kernel so the comparison tolerance can be tight).
def reference_forward(x, params):
    def lin(h, w, b):
        return jnp.dot(h.astype(jnp.bfloat16), w.astype(jnp.bfloat16),
                       preferred_element_type=jnp.float32) + b

    def bn(h, g, be):
        mean = jnp.mean(h, axis=0, keepdims=True)
        var = jnp.mean((h - mean) ** 2, axis=0, keepdims=True)
        return (h - mean) * lax.rsqrt(var + BN_EPS) * g + be

    def leaky(h):
        return jnp.where(h >= 0, h, LEAKY_SLOPE * h)

    h = leaky(bn(lin(x, params["w1"], params["b1"]),
                 params["gamma1"], params["beta1"]))
    h = leaky(bn(lin(h, params["w2"], params["b2"]),
                 params["gamma2"], params["beta2"]))
    h = leaky(bn(lin(h, params["w3"], params["b3"]),
                 params["gamma3"], params["beta3"]))
    z = lin(h, params["w4"], params["b4"])
    return jax.nn.sigmoid(z)


if __name__ == "__main__":
    INPUT_SHAPE = 32   # feature dim of the discriminator input

    key = jax.random.PRNGKey(0)
    kx1, kx2, kp = jax.random.split(key, 3)
    params = init_params(kp, INPUT_SHAPE)
    packed = pack_params(params)                       # hoisted: pack once

    fwd = jax.jit(discriminator_forward)               # jitted dispatch
    tiled_fwd = jax.jit(functools.partial(_tiled_forward, tile_b=128))

    # 1) small batch -> fused whole-batch kernel
    x_small = jax.random.normal(kx1, (8, INPUT_SHAPE), jnp.float32)
    out_small = jax.block_until_ready(fwd(x_small, packed))
    ref_small = reference_forward(x_small, params)
    assert out_small.shape == (8, 1)
    assert bool(jnp.all(jnp.isfinite(out_small)))
    assert bool(jnp.all((out_small >= 0.0) & (out_small <= 1.0)))
    assert float(jnp.max(jnp.abs(out_small - ref_small))) < 5e-3

    # 2) multi-tile batch (not a multiple of the tile) -> tiled 4-sweep kernel
    x_big = jax.random.normal(kx2, (300, INPUT_SHAPE), jnp.float32)
    w1, w2, w3, vec = packed
    out_big = jax.block_until_ready(tiled_fwd(x_big, w1, w2, w3, vec))
    ref_big = reference_forward(x_big, params)
    assert out_big.shape == (300, 1)
    assert bool(jnp.all(jnp.isfinite(out_big)))
    assert bool(jnp.all((out_big >= 0.0) & (out_big <= 1.0)))
    assert float(jnp.max(jnp.abs(out_big - ref_big))) < 5e-3

    print("KERNEL_OK")
</pallas_src>

<mosaic_0001>
module attributes {stable_mosaic.version = 11 : i64} {
  func.func @_fused_kernel(%arg0: memref<8x32xf32, #tpu.memory_space<vmem>>, %arg1: memref<32x64xbf16, #tpu.memory_space<vmem>>, %arg2: memref<64x32xbf16, #tpu.memory_space<vmem>>, %arg3: memref<32x16xbf16, #tpu.memory_space<vmem>>, %arg4: memref<8x128xf32, #tpu.memory_space<vmem>>, %arg5: memref<8x1xf32, #tpu.memory_space<vmem>>) attributes {dimension_semantics = [], scalar_prefetch = 0 : i64, scratch_operands = 0 : i64, tpu.core_type = #tpu.core_type<tc>} {
    %c0 = arith.constant 0 : index
    %c0_0 = arith.constant 0 : index
    %0 = vector.load %arg4[%c0, %c0_0] : memref<8x128xf32, #tpu.memory_space<vmem>>, vector<8x128xf32>
    %1 = vector.extract_strided_slice %0 {offsets = [0, 0], sizes = [1, 64], strides = [1, 1]} : vector<8x128xf32> to vector<1x64xf32>
    %2 = vector.extract_strided_slice %0 {offsets = [1, 0], sizes = [1, 64], strides = [1, 1]} : vector<8x128xf32> to vector<1x64xf32>
    %3 = vector.extract_strided_slice %0 {offsets = [2, 0], sizes = [1, 32], strides = [1, 1]} : vector<8x128xf32> to vector<1x32xf32>
    %4 = vector.extract_strided_slice %0 {offsets = [3, 0], sizes = [1, 32], strides = [1, 1]} : vector<8x128xf32> to vector<1x32xf32>
    %5 = vector.extract_strided_slice %0 {offsets = [4, 0], sizes = [1, 16], strides = [1, 1]} : vector<8x128xf32> to vector<1x16xf32>
    %6 = vector.extract_strided_slice %0 {offsets = [5, 0], sizes = [1, 16], strides = [1, 1]} : vector<8x128xf32> to vector<1x16xf32>
    %7 = vector.extract_strided_slice %0 {offsets = [6, 0], sizes = [1, 1], strides = [1, 1]} : vector<8x128xf32> to vector<1x1xf32>
    %8 = vector.extract_strided_slice %0 {offsets = [7, 0], sizes = [1, 16], strides = [1, 1]} : vector<8x128xf32> to vector<1x16xf32>
    %c0_1 = arith.constant 0 : index
    %c0_2 = arith.constant 0 : index
    %9 = vector.load %arg0[%c0_1, %c0_2] : memref<8x32xf32, #tpu.memory_space<vmem>>, vector<8x32xf32>
    %10 = arith.truncf %9 : vector<8x32xf32> to vector<8x32xbf16>
    %c0_3 = arith.constant 0 : index
    %c0_4 = arith.constant 0 : index
    %11 = vector.load %arg1[%c0_3, %c0_4] : memref<32x64xbf16, #tpu.memory_space<vmem>>, vector<32x64xbf16>
    %cst = arith.constant dense<0.000000e+00> : vector<8x64xf32>
    %12 = tpu.matmul %10, %11, %cst {dimension_numbers = #tpu.dot_dimension_numbers<[1], [0], [0], [1], [0, 0, 1, 1], [], []>} : vector<8x32xbf16>, vector<32x64xbf16>, vector<8x64xf32> -> vector<8x64xf32>
    %cst_5 = arith.constant dense<0.000000e+00> : vector<64xf32>
    %13 = vector.multi_reduction <add>, %12, %cst_5 [0] : vector<8x64xf32> to vector<64xf32>
    %14 = vector.shape_cast %13 : vector<64xf32> to vector<1x64xf32>
    %cst_6 = arith.constant 8.000000e+00 : f32
    %15 = vector.broadcast %cst_6 : f32 to vector<1x64xf32>
    %16 = arith.divf %14, %15 : vector<1x64xf32>
    %17 = vector.broadcast %16 : vector<1x64xf32> to vector<8x64xf32>
    %18 = arith.subf %12, %17 : vector<8x64xf32>
    %19 = arith.mulf %18, %18 : vector<8x64xf32>
    %cst_7 = arith.constant dense<0.000000e+00> : vector<64xf32>
    %20 = vector.multi_reduction <add>, %19, %cst_7 [0] : vector<8x64xf32> to vector<64xf32>
    %21 = vector.shape_cast %20 : vector<64xf32> to vector<1x64xf32>
    %cst_8 = arith.constant 8.000000e+00 : f32
    %22 = vector.broadcast %cst_8 : f32 to vector<1x64xf32>
    %23 = arith.divf %21, %22 : vector<1x64xf32>
    %cst_9 = arith.constant 9.99999974E-6 : f32
    %24 = vector.broadcast %cst_9 : f32 to vector<1x64xf32>
    %25 = arith.addf %23, %24 : vector<1x64xf32>
    %26 = math.rsqrt %25 : vector<1x64xf32>
    %27 = vector.broadcast %26 : vector<1x64xf32> to vector<8x64xf32>
    %28 = arith.mulf %18, %27 : vector<8x64xf32>
    %29 = vector.broadcast %1 : vector<1x64xf32> to vector<8x64xf32>
    %30 = arith.mulf %28, %29 : vector<8x64xf32>
    %31 = vector.broadcast %2 : vector<1x64xf32> to vector<8x64xf32>
    %32 = arith.addf %30, %31 : vector<8x64xf32>
    %cst_10 = arith.constant 0.00999999977 : f32
    %33 = vector.broadcast %cst_10 : f32 to vector<8x64xf32>
    %34 = arith.mulf %33, %32 : vector<8x64xf32>
    %35 = arith.maximumf %32, %34 : vector<8x64xf32>
    %36 = arith.truncf %35 : vector<8x64xf32> to vector<8x64xbf16>
    %c0_11 = arith.constant 0 : index
    %c0_12 = arith.constant 0 : index
    %37 = vector.load %arg2[%c0_11, %c0_12] : memref<64x32xbf16, #tpu.memory_space<vmem>>, vector<64x32xbf16>
    %cst_13 = arith.constant dense<0.000000e+00> : vector<8x32xf32>
    %38 = tpu.matmul %36, %37, %cst_13 {dimension_numbers = #tpu.dot_dimension_numbers<[1], [0], [0], [1], [0, 0, 1, 1], [], []>} : vector<8x64xbf16>, vector<64x32xbf16>, vector<8x32xf32> -> vector<8x32xf32>
    %cst_14 = arith.constant dense<0.000000e+00> : vector<32xf32>
    %39 = vector.multi_reduction <add>, %38, %cst_14 [0] : vector<8x32xf32> to vector<32xf32>
    %40 = vector.shape_cast %39 : vector<32xf32> to vector<1x32xf32>
    %cst_15 = arith.constant 8.000000e+00 : f32
    %41 = vector.broadcast %cst_15 : f32 to vector<1x32xf32>
    %42 = arith.divf %40, %41 : vector<1x32xf32>
    %43 = vector.broadcast %42 : vector<1x32xf32> to vector<8x32xf32>
    %44 = arith.subf %38, %43 : vector<8x32xf32>
    %45 = arith.mulf %44, %44 : vector<8x32xf32>
    %cst_16 = arith.constant dense<0.000000e+00> : vector<32xf32>
    %46 = vector.multi_reduction <add>, %45, %cst_16 [0] : vector<8x32xf32> to vector<32xf32>
    %47 = vector.shape_cast %46 : vector<32xf32> to vector<1x32xf32>
    %cst_17 = arith.constant 8.000000e+00 : f32
    %48 = vector.broadcast %cst_17 : f32 to vector<1x32xf32>
    %49 = arith.divf %47, %48 : vector<1x32xf32>
    %cst_18 = arith.constant 9.99999974E-6 : f32
    %50 = vector.broadcast %cst_18 : f32 to vector<1x32xf32>
    %51 = arith.addf %49, %50 : vector<1x32xf32>
    %52 = math.rsqrt %51 : vector<1x32xf32>
    %53 = vector.broadcast %52 : vector<1x32xf32> to vector<8x32xf32>
    %54 = arith.mulf %44, %53 : vector<8x32xf32>
    %55 = vector.broadcast %3 : vector<1x32xf32> to vector<8x32xf32>
    %56 = arith.mulf %54, %55 : vector<8x32xf32>
    %57 = vector.broadcast %4 : vector<1x32xf32> to vector<8x32xf32>
    %58 = arith.addf %56, %57 : vector<8x32xf32>
    %cst_19 = arith.constant 0.00999999977 : f32
    %59 = vector.broadcast %cst_19 : f32 to vector<8x32xf32>
    %60 = arith.mulf %59, %58 : vector<8x32xf32>
    %61 = arith.maximumf %58, %60 : vector<8x32xf32>
    %62 = arith.truncf %61 : vector<8x32xf32> to vector<8x32xbf16>
    %c0_20 = arith.constant 0 : index
    %c0_21 = arith.constant 0 : index
    %63 = vector.load %arg3[%c0_20, %c0_21] : memref<32x16xbf16, #tpu.memory_space<vmem>>, vector<32x16xbf16>
    %cst_22 = arith.constant dense<0.000000e+00> : vector<8x16xf32>
    %64 = tpu.matmul %62, %63, %cst_22 {dimension_numbers = #tpu.dot_dimension_numbers<[1], [0], [0], [1], [0, 0, 1, 1], [], []>} : vector<8x32xbf16>, vector<32x16xbf16>, vector<8x16xf32> -> vector<8x16xf32>
    %cst_23 = arith.constant dense<0.000000e+00> : vector<16xf32>
    %65 = vector.multi_reduction <add>, %64, %cst_23 [0] : vector<8x16xf32> to vector<16xf32>
    %66 = vector.shape_cast %65 : vector<16xf32> to vector<1x16xf32>
    %cst_24 = arith.constant 8.000000e+00 : f32
    %67 = vector.broadcast %cst_24 : f32 to vector<1x16xf32>
    %68 = arith.divf %66, %67 : vector<1x16xf32>
    %69 = vector.broadcast %68 : vector<1x16xf32> to vector<8x16xf32>
    %70 = arith.subf %64, %69 : vector<8x16xf32>
    %71 = arith.mulf %70, %70 : vector<8x16xf32>
    %cst_25 = arith.constant dense<0.000000e+00> : vector<16xf32>
    %72 = vector.multi_reduction <add>, %71, %cst_25 [0] : vector<8x16xf32> to vector<16xf32>
    %73 = vector.shape_cast %72 : vector<16xf32> to vector<1x16xf32>
    %cst_26 = arith.constant 8.000000e+00 : f32
    %74 = vector.broadcast %cst_26 : f32 to vector<1x16xf32>
    %75 = arith.divf %73, %74 : vector<1x16xf32>
    %cst_27 = arith.constant 9.99999974E-6 : f32
    %76 = vector.broadcast %cst_27 : f32 to vector<1x16xf32>
    %77 = arith.addf %75, %76 : vector<1x16xf32>
    %78 = math.rsqrt %77 : vector<1x16xf32>
    %79 = vector.broadcast %78 : vector<1x16xf32> to vector<8x16xf32>
    %80 = arith.mulf %70, %79 : vector<8x16xf32>
    %81 = vector.broadcast %5 : vector<1x16xf32> to vector<8x16xf32>
    %82 = arith.mulf %80, %81 : vector<8x16xf32>
    %83 = vector.broadcast %6 : vector<1x16xf32> to vector<8x16xf32>
    %84 = arith.addf %82, %83 : vector<8x16xf32>
    %cst_28 = arith.constant 0.00999999977 : f32
    %85 = vector.broadcast %cst_28 : f32 to vector<8x16xf32>
    %86 = arith.mulf %85, %84 : vector<8x16xf32>
    %87 = arith.maximumf %84, %86 : vector<8x16xf32>
    %88 = vector.broadcast %8 : vector<1x16xf32> to vector<8x16xf32>
    %89 = arith.mulf %87, %88 : vector<8x16xf32>
    %cst_29 = arith.constant dense<0.000000e+00> : vector<8xf32>
    %90 = vector.multi_reduction <add>, %89, %cst_29 [1] : vector<8x16xf32> to vector<8xf32>
    %91 = vector.shape_cast %90 : vector<8xf32> to vector<8x1xf32>
    %92 = vector.broadcast %7 : vector<1x1xf32> to vector<8x1xf32>
    %93 = arith.addf %91, %92 : vector<8x1xf32>
    %cst_30 = arith.constant 0.000000e+00 : f32
    %94 = vector.broadcast %cst_30 : f32 to vector<8x1xf32>
    %95 = arith.subf %94, %93 : vector<8x1xf32>
    %96 = math.exp %95 : vector<8x1xf32>
    %cst_31 = arith.constant 1.000000e+00 : f32
    %97 = vector.broadcast %cst_31 : f32 to vector<8x1xf32>
    %98 = arith.addf %97, %96 : vector<8x1xf32>
    %cst_32 = arith.constant 1.000000e+00 : f32
    %99 = vector.broadcast %cst_32 : f32 to vector<8x1xf32>
    %100 = arith.divf %99, %98 : vector<8x1xf32>
    %c0_33 = arith.constant 0 : index
    %c0_34 = arith.constant 0 : index
    %101 = vector.load %arg5[%c0_33, %c0_34] : memref<8x1xf32, #tpu.memory_space<vmem>>, vector<8x1xf32>
    tpu.vector_store %arg5[%c0_33, %c0_34], %100 {strides = array<i32>} : memref<8x1xf32, #tpu.memory_space<vmem>>, vector<8x1xf32>,
    return
  }
}

</mosaic_0001>

<bundles_post_ra>
// kernel: discriminator_forward.1
= control target key start
LH: loop header
LB: loop body
LE: loop exit
PB: predicated region body
PF: predicated region fallthrough
CT: control target
= control target key end

     0   :  { %v417_v0 = vmov 0.0   ;;  %vm418_vm0 = vmmov 0   ;;  %vm40_vm1 = vcmask 261120   ;;  %vm84_vm2 = vcmask 523264   ;;  %s523_s1 = inlined_call_operand.vmem [shape: bf16[32,64], index: 1, kind: input, shape index: {}]   ;;  %s524_s0 = inlined_call_operand.vmem [shape: f32[8,32], index: 0, kind: input, shape index: {}]   ;;  %s525_s2 = inlined_call_operand.vmem [shape: bf16[64,32], index: 2, kind: input, shape index: {}]   ;;  %s526_s4 = inlined_call_operand.vmem [shape: f32[8,128], index: 4, kind: input, shape index: {}]   ;;  %s527_s3 = inlined_call_operand.vmem [shape: bf16[32,16], index: 3, kind: input, shape index: {}]   ;;  %s528_s5 = inlined_call_operand.vmem [shape: f32[8,1], index: 5, kind: output, shape index: {}]  }
   0x1   :  { %369 = vmatprep.subr.bf16.mxu0 %v417_v0  ;;  %v399_v1 = vld [vmem:[%s523_s1] sm:$0xff]   ;;  %373 = vmatprep.mubr.msk.bf16.mxu0 %vm418_vm0, %v417_v0  ;;  %v400_v2 = vld [vmem:[%s523_s1 + $0x8] sm:$0xff]   ;;  %v403_v7 = vld [vmem:[%s525_s2 + $0x10] sm:$0xff]   ;;  %v107_v31 = vlaneseq  ;;  %vm288_vm3 = vcmask 130048   ;;  %vm341_vm4 = vcmask 7168  }
   0x2   :  { %377 = vmatprep.subr.bf16.mxu1 %v417_v0  ;;  %385 = vmatprep.mubr.msk.bf16.mxu1 %vm418_vm0, %v417_v0  ;;  %v22_v3 = vld [vmem:[%s524_s0] sm:$0xff]  ;;  %v402_v6 = vld [vmem:[%s525_s2 + $0x8] sm:$0xff]   ;;  %v404_v8 = vld [vmem:[%s525_s2 + $0x18] sm:$0xff]  }
   0x3   :  { %370 = vmatpush3.bf16.msra.mxu0 %v399_v1  ;;  %v23_v4 = vpack.c.bf16 %v22_v3, %v22_v3  ;;  %v401_v5 = vld [vmem:[%s525_s2] sm:$0xff]   ;;  %v483_v33 = vshrl.u32 %v107_v31, 7  ;;  %v406_v47 = vld [vmem:[%s527_s3 + $0x8] sm:$0xff]  }
   0x4   :  { %371 = vmatprep.subr.bf16.mxu0 %v417_v0  ;;  %378 = vmatpush3.bf16.msra.mxu1 %v401_v5  ;;  %v489_v35 = vld [vmem:[%s526_s4] sm:$0xff] }
   0x5   :  { %379 = vmatprep.subr.bf16.mxu1 %v417_v0  ;;  %v109_v34 = vsub.s32 0, %v483_v33  ;;  %v114_v36 = vsub.s32 1, %v483_v33  ;;  %v405_v46 = vld [vmem:[%s527_s3] sm:$0xff]  }
   0x7   :  { %372 = vmatpush3.bf16.msra.mxu0 %v400_v2  ;;  %v110_v37 = vrot.slane %v489_v35, %v109_v34  ;;  %v115_v40 = vrot.slane %v489_v35, %v114_v36 }
   0x8   :  { %389 = vmatprep.subr.bf16.mxu0 %v417_v0  ;;  %380 = vmatpush3.bf16.msra.mxu1 %v402_v6 }
   0x9   :  { %381 = vmatprep.subr.bf16.mxu1 %v417_v0 }
   0xa   :  { %374 = vmatmul.mubr.msk.bf16.vlgmr.msra.gmra.mrb[0].mxu0 %vm40_vm1, %v23_v4 }
   0xb   :  { %393 = vmatprep.mubr.msk.bf16.mxu0 %vm418_vm0, %v417_v0  ;;  %390 = vmatpush3.bf16.msra.mxu0 %v405_v46 }
   0xc   :  { %382 = vmatpush3.bf16.msra.mxu1 %v403_v7  ;;  %391 = vmatprep.subr.bf16.mxu0 %v417_v0  ;;  %v218_v7 = vsub.s32 2, %v483_v33 }
   0xd   :  { %383 = vmatprep.subr.bf16.mxu1 %v417_v0 }
   0xf   :  { %392 = vmatpush3.bf16.msra.mxu0 %v406_v47 }
  0x10   :  { %384 = vmatpush3.bf16.msra.mxu1 %v404_v8  ;;  %v223_v8 = vsub.s32 3, %v483_v33 }
  0xdd   :  { %v78_v9 = vpop.f32.mrb[0].mxu0 }
  0xde   :  { %v85_v10 = vsel %vm84_vm2, %v78_v9, 0.0  ;;  %v375_v11 = vpop.f32.mrb[1].mxu0 }
  0xdf   :  { %v86_v12 = vrot.slane %v85_v10, 4  ;;  %v81_v13 = vpop.f32.mrb[2].mxu0 }
  0xe0   :  { %v376_v14 = vpop.f32.mrb[3].mxu0 }
  0xe1   :  { %v87_v15 = vadd.f32 %v86_v12, %v85_v10  ;;  %v224_v12 = vrot.slane %v489_v35, %v223_v8 }
  0xe3   :  { %v88_v16 = vrot.slane %v87_v15, 2 }
  0xe5   :  { %v89_v17 = vadd.f32 %v88_v16, %v87_v15 }
  0xe7   :  { %v90_v18 = vrot.slane %v89_v17, 1 }
  0xe9   :  { %v91_v19 = vadd.f32 %v90_v18, %v89_v17 }
  0xeb   :  { %v93_v20 = vmul.f32 0.125, %v91_v19 }
  0xed   :  { %v94_v21 = vsub.f32 %v78_v9, %v93_v20  ;;  %v219_v9 = vrot.slane %v489_v35, %v218_v7 }
  0xef   :  { %v95_v22 = vmul.f32 %v94_v21, %v94_v21 }
  0xf1   :  { %v96_v23 = vsel %vm84_vm2, %v95_v22, 0.0 }
  0xf2   :  { %v97_v24 = vrot.slane %v96_v23, 4 }
  0xf4   :  { %v98_v25 = vadd.f32 %v97_v24, %v96_v23 }
  0xf6   :  { %v99_v26 = vrot.slane %v98_v25, 2 }
  0xf8   :  { %v100_v27 = vadd.f32 %v99_v26, %v98_v25 }
  0xfa   :  { %v101_v28 = vrot.slane %v100_v27, 1 }
  0xfc   :  { %v102_v29 = vadd.f32 %v101_v28, %v100_v27 }
  0xfe   :  { %v103_v30 = vmul.f32 0.125, %v102_v29 }
 0x100   :  { %v104_v32 = vadd.f32 1e-05, %v103_v30 }
 0x102   :  { %407 = vrsqrt.f32 %v104_v32 }
 0x10c   :  { %v408_v38 = vpop.eup %407 }
 0x10d   :  { %v106_v39 = vmul.f32 %v408_v38, %v94_v21 }
 0x10f   :  { %v111_v41 = vmul.f32 %v110_v37, %v106_v39 }
 0x111   :  { %v116_v42 = vadd.f32 %v115_v40, %v111_v41 }
 0x113   :  { %v117_v43 = vmul.f32 0.01, %v116_v42 }
 0x115   :  { %v118_v44 = vmax.f32 %v116_v42, %v117_v43  ;;  %v312_v43 = vsub.s32 4, %v483_v33 }
 0x117   :  { %v119_v45 = vpack.c.bf16 %v118_v44, %v118_v44  ;;  %v317_v44 = vsub.s32 5, %v483_v33 }
 0x119   :  { %386 = vmatmul.mubr.msk.bf16.vlgmr.msra.gmra.mrb[0].mxu1 %vm84_vm2, %v119_v45  ;;  %v313_v45 = vrot.slane %v489_v35, %v312_v43 }
 0x1ec   :  { %v189_v48 = vpop.f32.mrb[0].mxu1 }
 0x1ed   :  { %v195_v49 = vsel %vm40_vm1, %v189_v48, 0.0  ;;  %v387_v50 = vpop.f32.mrb[1].mxu1 }
 0x1ee   :  { %v196_v51 = vrot.slane %v195_v49, 4  ;;  %v192_v52 = vpop.f32.mrb[2].mxu1  ;;  %v324_v50 = vsub.s32 7, %v483_v33 }
 0x1ef   :  { %v388_v53 = vpop.f32.mrb[3].mxu1 }
 0x1f0   :  { %v197_v54 = vadd.f32 %v196_v51, %v195_v49  ;;  %v325_v53 = vrot.slane %v489_v35, %v324_v50 }
 0x1f2   :  { %v198_v55 = vrot.slane %v197_v54, 2 }
 0x1f4   :  { %v199_v56 = vadd.f32 %v198_v55, %v197_v54 }
 0x1f6   :  { %v200_v57 = vrot.slane %v199_v56, 1 }
 0x1f8   :  { %v201_v58 = vadd.f32 %v200_v57, %v199_v56  ;;  %v332_v57 = vsub.s32 6, %v483_v33 }
 0x1fa   :  { %v202_v59 = vmul.f32 0.125, %v201_v58  ;;  %v333_v58 = vrot.slane %v489_v35, %v332_v57 }
 0x1fc   :  { %v203_v60 = vsub.f32 %v189_v48, %v202_v59  ;;  %v318_v48 = vrot.slane %v489_v35, %v317_v44 }
 0x1fe   :  { %v204_v61 = vmul.f32 %v203_v60, %v203_v60 }
 0x200   :  { %v205_v62 = vsel %vm40_vm1, %v204_v61, 0.0 }
 0x201   :  { %v206_v63 = vrot.slane %v205_v62, 4 }
 0x203   :  { %v207_v0 = vadd.f32 %v206_v63, %v205_v62 }
 0x205   :  { %v208_v1 = vrot.slane %v207_v0, 2 }
 0x207   :  { %v209_v2 = vadd.f32 %v208_v1, %v207_v0 }
 0x209   :  { %v210_v3 = vrot.slane %v209_v2, 1 }
 0x20b   :  { %v211_v4 = vadd.f32 %v210_v3, %v209_v2 }
 0x20d   :  { %v212_v5 = vmul.f32 0.125, %v211_v4 }
 0x20f   :  { %v213_v6 = vadd.f32 1e-05, %v212_v5 }
 0x211   :  { %409 = vrsqrt.f32 %v213_v6 }
 0x21b   :  { %v410_v10 = vpop.eup %409 }
 0x21c   :  { %v215_v11 = vmul.f32 %v410_v10, %v203_v60 }
 0x21e   :  { %v220_v13 = vmul.f32 %v219_v9, %v215_v11 }
 0x220   :  { %v225_v14 = vadd.f32 %v224_v12, %v220_v13 }
 0x222   :  { %v226_v15 = vmul.f32 0.01, %v225_v14 }
 0x224   :  { %v227_v16 = vmax.f32 %v225_v14, %v226_v15 }
 0x226   :  { %v228_v17 = vpack.c.bf16 %v227_v16, %v227_v16 }
 0x228   :  { %394 = vmatmul.mubr.msk.bf16.vlgmr.msra.gmra.mrb[4].mxu0 %vm40_vm1, %v228_v17 }
 0x2fb   :  { %v282_v18 = vpop.f32.mrb[4].mxu0 }
 0x2fc   :  { %v289_v19 = vsel %vm288_vm3, %v282_v18, 0.0  ;;  %v395_v20 = vpop.f32.mrb[5].mxu0 }
 0x2fd   :  { %v290_v21 = vrot.slane %v289_v19, 4  ;;  %v285_v22 = vpop.f32.mrb[6].mxu0 }
 0x2fe   :  { %v396_v23 = vpop.f32.mrb[7].mxu0 }
 0x2ff   :  { %v291_v24 = vadd.f32 %v290_v21, %v289_v19 }
 0x301   :  { %v292_v25 = vrot.slane %v291_v24, 2 }
 0x303   :  { %v293_v26 = vadd.f32 %v292_v25, %v291_v24 }
 0x305   :  { %v294_v27 = vrot.slane %v293_v26, 1 }
 0x307   :  { %v295_v28 = vadd.f32 %v294_v27, %v293_v26 }
 0x309   :  { %v296_v29 = vmul.f32 0.125, %v295_v28 }
 0x30b   :  { %v297_v30 = vsub.f32 %v282_v18, %v296_v29 }
 0x30d   :  { %v298_v31 = vmul.f32 %v297_v30, %v297_v30 }
 0x30f   :  { %v299_v32 = vsel %vm288_vm3, %v298_v31, 0.0 }
 0x310   :  { %v300_v34 = vrot.slane %v299_v32, 4 }
 0x312   :  { %v301_v36 = vadd.f32 %v300_v34, %v299_v32 }
 0x314   :  { %v302_v37 = vrot.slane %v301_v36, 2 }
 0x316   :  { %v303_v38 = vadd.f32 %v302_v37, %v301_v36 }
 0x318   :  { %v304_v39 = vrot.slane %v303_v38, 1 }
 0x31a   :  { %v305_v40 = vadd.f32 %v304_v39, %v303_v38 }
 0x31c   :  { %v306_v41 = vmul.f32 0.125, %v305_v40 }
 0x31e   :  { %v307_v42 = vadd.f32 1e-05, %v306_v41 }
 0x320   :  { %411 = vrsqrt.f32 %v307_v42 }
 0x32a   :  { %v412_v46 = vpop.eup %411 }
 0x32b   :  { %v309_v47 = vmul.f32 %v412_v46, %v297_v30 }
 0x32d   :  { %v314_v49 = vmul.f32 %v313_v45, %v309_v47 }
 0x32f   :  { %v319_v51 = vadd.f32 %v318_v48, %v314_v49 }
 0x331   :  { %v320_v52 = vmul.f32 0.01, %v319_v51 }
 0x333   :  { %v321_v54 = vmax.f32 %v319_v51, %v320_v52 }
 0x335   :  { %v326_v55 = vmul.f32 %v325_v53, %v321_v54 }
 0x337   :  { %v327_v56 = vsel %vm288_vm3, %v326_v55, 0.0 }
 0x338   :  { %328 = vadd.xlane.f32.xlu0 %v327_v56 }
 0x3c5   :  { %v329_v59 = vpop.xlane.xlu0 %328 }
 0x3c6   :  { %v334_v60 = vadd.f32 %v333_v58, %v329_v59 }
 0x3c8   :  { %v335_v61 = vsub.f32 0.0, %v334_v60 }
 0x3ca   :  { %v336_v62 = vmul.f32 1.442695, %v335_v61 }
 0x3cc   :  { %413 = vpow2.f32 %v336_v62 }
 0x3d6   :  { %v414_v63 = vpop.eup %413 }
 0x3d7   :  { %v338_v0 = vadd.f32 1.0, %v414_v63 }
 0x3d9   :  { %415 = vrcp.f32 %v338_v0 }
 0x3e3   :  { %v416_v1 = vpop.eup %415 }
 0x3e4   :  { %342 = vst.msk [vmem:[%s528_s5] sm:$0xff] %vm341_vm4, %v416_v1 }

</bundles_post_ra>
